<compile_context>
chip_gen: v6e
topology: v6e:2x2x1
jax: 0.10.0
libtpu: 0.0.40
codegen_flags: <defaults>
</compile_context>

<pallas_src>
import functools
import math

import jax
import jax.numpy as jnp
from jax.experimental import pallas as pl
from jax.experimental.pallas import tpu as pltpu


def _cdiv(a, b):
    return (a + b - 1) // b


def _round_up(x, m):
    return _cdiv(x, m) * m


def _layernorm_kernel(x_ref, w_ref, b_ref, o_ref, *, eps):
    """Plain path: one normalized row per sublane row (last dim = hidden)."""
    x = x_ref[...].astype(jnp.float32)
    inv_h = jnp.float32(1.0 / x.shape[-1])
    # Two-pass mean / population variance (eps inside the sqrt, torch semantics).
    mean = jnp.sum(x, axis=-1, keepdims=True) * inv_h
    d = x - mean
    var = jnp.sum(d * d, axis=-1, keepdims=True) * inv_h
    rstd = jax.lax.rsqrt(var + eps)
    w = w_ref[...].astype(jnp.float32)
    b = b_ref[...].astype(jnp.float32)
    # Fused normalize+affine, reusing d from the variance pass.
    o_ref[...] = (d * rstd * w + b).astype(o_ref.dtype)


def _layernorm_folded_kernel(x_ref, w_ref, b_ref, s_ref, o_ref, *, eps, hidden):
    """Lane-folded path: each 128-lane row holds g = width // hidden independent
    normalized rows.  s_ref is the (width, width) block-diagonal 0/1 segment
    matrix; x @ s yields per-segment sums already broadcast back to every lane,
    so every VPU op and every store stays lane-dense."""
    x = x_ref[...].astype(jnp.float32)            # (block_rows, width)
    s = s_ref[...]                                # (width, width) bf16, exact 0/1
    inv_h = jnp.float32(1.0 / hidden)

    def seg_sum(v):
        # f32-accurate segment sums on the (otherwise idle) MXU: split the f32
        # operand into bf16 hi/lo parts; s is exact in bf16, so two bf16 passes
        # recover ~f32 accuracy with f32 accumulation.
        hi = v.astype(jnp.bfloat16)
        lo = (v - hi.astype(jnp.float32)).astype(jnp.bfloat16)
        return (jnp.dot(hi, s, preferred_element_type=jnp.float32)
                + jnp.dot(lo, s, preferred_element_type=jnp.float32))

    mean = seg_sum(x) * inv_h                     # broadcast within each segment
    d = x - mean
    var = seg_sum(d * d) * inv_h                  # two-pass variance
    rstd = jax.lax.rsqrt(var + eps)
    w = w_ref[...].astype(jnp.float32)
    b = b_ref[...].astype(jnp.float32)
    o_ref[...] = (d * rstd * w + b).astype(o_ref.dtype)


def _choose_block_rows(n_rows, width, itemsize,
                       target_tile_bytes=4 << 20, min_grid_steps=8):
    """Moderate tiles (~4 MiB per buffer) and enough grid steps to pipeline."""
    sublane = max(8, 32 // max(itemsize, 1))      # f32 -> 8, bf16 -> 16, i8 -> 32
    if n_rows <= sublane:
        return n_rows                             # block == full dim is allowed
    row_bytes = width * itemsize
    br = max(sublane, min(target_tile_bytes // row_bytes, 4096))
    br = (br // sublane) * sublane
    # Keep >= min_grid_steps blocks where possible so input DMA and output
    # writeback actually overlap with compute instead of being exposed.
    cap = _round_up(_cdiv(n_rows, min_grid_steps), sublane)
    br = max(sublane, min(br, cap))
    # Best effort: even block count so v7x's two TensorCores stay balanced.
    n_blk = _cdiv(n_rows, br)
    if n_blk > 1 and n_blk % 2 == 1:
        br2 = max(sublane, _round_up(_cdiv(n_rows, n_blk + 1), sublane))
        if _cdiv(n_rows, br2) % 2 == 0:
            br = br2
    return br


def layer_norm(x, weights, bias, eps=1e-5, block_rows=None):
    """LayerNorm over the last axis of x (any leading dims), matching torch
    semantics: population variance, eps inside the sqrt, y = w * x_hat + b."""
    orig_shape = x.shape
    hidden = orig_shape[-1]
    rows = math.prod(orig_shape[:-1])
    itemsize = jnp.dtype(x.dtype).itemsize

    # Lane folding: for hidden < 128 pack g rows into one 128-lane row so every
    # load / store is lane-dense.  Requires hidden | 128 and rows % g == 0; the
    # reshape is a free row-major re-layout because rows are independent.
    g = 128 // hidden if (hidden < 128 and 128 % hidden == 0) else 1
    fold = g > 1 and rows % g == 0 and (rows // g) >= 8

    if fold:
        width, n_rows = g * hidden, rows // g
        x2 = x.reshape(n_rows, width)
        w2 = jnp.tile(weights.reshape(-1), g).reshape(1, width)
        b2 = jnp.tile(bias.reshape(-1), g).reshape(1, width)
        seg = jnp.arange(width) // hidden
        smat = (seg[:, None] == seg[None, :]).astype(jnp.bfloat16)
        kernel = functools.partial(_layernorm_folded_kernel, eps=eps, hidden=hidden)
        extra_args = (smat,)
        extra_specs = [pl.BlockSpec((width, width), lambda i: (0, 0))]
    else:
        width, n_rows = hidden, rows
        x2 = x.reshape(n_rows, width)
        w2 = weights.reshape(1, width)
        b2 = bias.reshape(1, width)
        kernel = functools.partial(_layernorm_kernel, eps=eps)
        extra_args = ()
        extra_specs = []
        # TODO(synk): when hidden < 128 but rows % g != 0 this fallback still
        # emits masked (non-lane-dense) stores; padding rows to a multiple of g
        # would fix it at the cost of an extra HBM pass.

    if block_rows is None:
        block_rows = _choose_block_rows(n_rows, width, itemsize)
    n_blocks = _cdiv(n_rows, block_rows)
    grid = (n_blocks,)

    tile_bytes = block_rows * width * itemsize
    want_buffered = (hasattr(pl, "Buffered") and tile_bytes < (1 << 20)
                     and n_blocks > 2)
    # Scoped-VMEM budget for what we actually allocate (stays well under the
    # 64 MiB physical VMEM of v7x; no generation-specific sizing needed).
    vmem_needed = ((3 if want_buffered else 2) * tile_bytes      # input buffers
                   + 2 * tile_bytes                               # output buffers
                   + 4 * width * jnp.dtype(weights.dtype).itemsize * 2  # w, b
                   + (width * width * 2 * 2 if fold else 0)       # segment matrix
                   + (4 << 20))                                   # headroom
    vmem_limit = int(max(vmem_needed, 16 << 20))

    def call(buffered):
        if buffered:
            x_spec = pl.BlockSpec((block_rows, width), lambda i: (i, 0),
                                  pipeline_mode=pl.Buffered(3))
        else:
            x_spec = pl.BlockSpec((block_rows, width), lambda i: (i, 0))
        return pl.pallas_call(
            kernel,
            out_shape=jax.ShapeDtypeStruct((n_rows, width), x.dtype),
            grid_spec=pltpu.PrefetchScalarGridSpec(
                num_scalar_prefetch=0,
                grid=grid,
                in_specs=[x_spec,
                          pl.BlockSpec((1, width), lambda i: (0, 0)),
                          pl.BlockSpec((1, width), lambda i: (0, 0)),
                          *extra_specs],
                out_specs=pl.BlockSpec((block_rows, width), lambda i: (i, 0)),
            ),
            compiler_params=pltpu.CompilerParams(
                dimension_semantics=("parallel",),
                vmem_limit_bytes=vmem_limit,
            ),
        )(x2, w2, b2, *extra_args)

    # Rows are fully independent, so a partial tail block computes on padded
    # (unspecified) rows and their out-of-bounds stores are dropped -- safe.
    if want_buffered:
        try:
            out = call(True)
        except Exception:
            # This JAX build rejects pipeline_mode / Buffered(3): use the
            # default 2-deep pipeline instead.
            out = call(False)
    else:
        out = call(False)
    return out.reshape(orig_shape)


if __name__ == "__main__":
    eps = 1e-5
    hidden = 32  # num_dims

    def ref_ln(a, w, b):
        a32 = a.astype(jnp.float32)
        mean = jnp.mean(a32, axis=-1, keepdims=True)
        var = jnp.mean((a32 - mean) ** 2, axis=-1, keepdims=True)
        return (w * ((a32 - mean) / jnp.sqrt(var + eps)) + b).astype(a.dtype)

    # Module-default parameters: weights = ones, bias = zeros.
    w_def = jnp.ones((hidden,), dtype=jnp.float32)
    b_def = jnp.zeros((hidden,), dtype=jnp.float32)

    # Case 1: lane-folded fast path (rows divisible by g = 128 // hidden).
    x1 = jax.random.normal(jax.random.PRNGKey(0), (2, 16, hidden), dtype=jnp.float32)
    y1 = jax.block_until_ready(layer_norm(x1, w_def, b_def, eps=eps))
    assert jnp.allclose(y1, ref_ln(x1, w_def, b_def), atol=2e-5, rtol=1e-5), "case1 mismatch"

    # Case 2: multi-block folded grid (exercises pipelining + even grid split)
    # with non-trivial affine parameters to validate the fused scale/shift.
    w_aff = 1.0 + 0.5 * jnp.arange(hidden, dtype=jnp.float32) / hidden
    b_aff = 0.01 * jnp.arange(hidden, dtype=jnp.float32)
    x2 = jax.random.normal(jax.random.PRNGKey(1), (4, 64, hidden), dtype=jnp.float32)
    y2 = jax.block_until_ready(layer_norm(x2, w_aff, b_aff, eps=eps))
    assert jnp.allclose(y2, ref_ln(x2, w_aff, b_aff), atol=2e-5, rtol=1e-5), "case2 mismatch"

    # Case 3: rows not divisible by g -> plain fallback path with a masked tail
    # block (15 rows, block_rows = 8, grid = 2).
    x3 = jax.random.normal(jax.random.PRNGKey(2), (3, 5, hidden), dtype=jnp.float32)
    y3 = jax.block_until_ready(layer_norm(x3, w_def, b_def, eps=eps))
    assert jnp.allclose(y3, ref_ln(x3, w_def, b_def), atol=1e-5, rtol=1e-5), "case3 mismatch"

    print("KERNEL_OK")
</pallas_src>

<mosaic_0001>
module attributes {stable_mosaic.version = 11 : i64} {
  func.func @_layernorm_folded_kernel(%arg0: i32, %arg1: memref<8x128xf32, #tpu.memory_space<vmem>>, %arg2: memref<1x128xf32, #tpu.memory_space<vmem>>, %arg3: memref<1x128xf32, #tpu.memory_space<vmem>>, %arg4: memref<128x128xbf16, #tpu.memory_space<vmem>>, %arg5: memref<8x128xf32, #tpu.memory_space<vmem>>) attributes {dimension_semantics = [#tpu.dimension_semantics<parallel>], iteration_bounds = array<i64: 1>, scalar_prefetch = 0 : i64, scratch_operands = 0 : i64, tpu.core_type = #tpu.core_type<tc>, window_params = [{transform_indices = @transform_0, window_bounds = array<i64: 8, 128>}, {pipeline_mode = #tpu.pipeline_mode<synchronous>, transform_indices = @transform_1, window_bounds = array<i64: 1, 128>}, {pipeline_mode = #tpu.pipeline_mode<synchronous>, transform_indices = @transform_2, window_bounds = array<i64: 1, 128>}, {pipeline_mode = #tpu.pipeline_mode<synchronous>, transform_indices = @transform_3, window_bounds = array<i64: 128, 128>}, {transform_indices = @transform_4, window_bounds = array<i64: 8, 128>}]} {
    %c0 = arith.constant 0 : index
    %c0_0 = arith.constant 0 : index
    %0 = vector.load %arg1[%c0, %c0_0] : memref<8x128xf32, #tpu.memory_space<vmem>>, vector<8x128xf32>
    %c0_1 = arith.constant 0 : index
    %c0_2 = arith.constant 0 : index
    %1 = vector.load %arg4[%c0_1, %c0_2] : memref<128x128xbf16, #tpu.memory_space<vmem>>, vector<128x128xbf16>
    %2 = arith.truncf %0 : vector<8x128xf32> to vector<8x128xbf16>
    %3 = arith.extf %2 : vector<8x128xbf16> to vector<8x128xf32>
    %4 = arith.subf %0, %3 : vector<8x128xf32>
    %5 = arith.truncf %4 : vector<8x128xf32> to vector<8x128xbf16>
    %cst = arith.constant dense<0.000000e+00> : vector<8x128xf32>
    %6 = tpu.matmul %2, %1, %cst {dimension_numbers = #tpu.dot_dimension_numbers<[1], [0], [0], [1], [0, 0, 1, 1], [], []>} : vector<8x128xbf16>, vector<128x128xbf16>, vector<8x128xf32> -> vector<8x128xf32>
    %cst_3 = arith.constant dense<0.000000e+00> : vector<8x128xf32>
    %7 = tpu.matmul %5, %1, %cst_3 {dimension_numbers = #tpu.dot_dimension_numbers<[1], [0], [0], [1], [0, 0, 1, 1], [], []>} : vector<8x128xbf16>, vector<128x128xbf16>, vector<8x128xf32> -> vector<8x128xf32>
    %8 = arith.addf %6, %7 : vector<8x128xf32>
    %cst_4 = arith.constant 3.125000e-02 : f32
    %9 = vector.broadcast %cst_4 : f32 to vector<8x128xf32>
    %10 = arith.mulf %8, %9 : vector<8x128xf32>
    %11 = arith.subf %0, %10 : vector<8x128xf32>
    %12 = arith.mulf %11, %11 : vector<8x128xf32>
    %13 = arith.truncf %12 : vector<8x128xf32> to vector<8x128xbf16>
    %14 = arith.extf %13 : vector<8x128xbf16> to vector<8x128xf32>
    %15 = arith.subf %12, %14 : vector<8x128xf32>
    %16 = arith.truncf %15 : vector<8x128xf32> to vector<8x128xbf16>
    %cst_5 = arith.constant dense<0.000000e+00> : vector<8x128xf32>
    %17 = tpu.matmul %13, %1, %cst_5 {dimension_numbers = #tpu.dot_dimension_numbers<[1], [0], [0], [1], [0, 0, 1, 1], [], []>} : vector<8x128xbf16>, vector<128x128xbf16>, vector<8x128xf32> -> vector<8x128xf32>
    %cst_6 = arith.constant dense<0.000000e+00> : vector<8x128xf32>
    %18 = tpu.matmul %16, %1, %cst_6 {dimension_numbers = #tpu.dot_dimension_numbers<[1], [0], [0], [1], [0, 0, 1, 1], [], []>} : vector<8x128xbf16>, vector<128x128xbf16>, vector<8x128xf32> -> vector<8x128xf32>
    %19 = arith.addf %17, %18 : vector<8x128xf32>
    %cst_7 = arith.constant 3.125000e-02 : f32
    %20 = vector.broadcast %cst_7 : f32 to vector<8x128xf32>
    %21 = arith.mulf %19, %20 : vector<8x128xf32>
    %cst_8 = arith.constant 9.99999974E-6 : f32
    %22 = vector.broadcast %cst_8 : f32 to vector<8x128xf32>
    %23 = arith.addf %21, %22 : vector<8x128xf32>
    %24 = math.rsqrt %23 : vector<8x128xf32>
    %c0_9 = arith.constant 0 : index
    %c0_10 = arith.constant 0 : index
    %25 = vector.load %arg2[%c0_9, %c0_10] : memref<1x128xf32, #tpu.memory_space<vmem>>, vector<1x128xf32>
    %c0_11 = arith.constant 0 : index
    %c0_12 = arith.constant 0 : index
    %26 = vector.load %arg3[%c0_11, %c0_12] : memref<1x128xf32, #tpu.memory_space<vmem>>, vector<1x128xf32>
    %27 = arith.mulf %11, %24 : vector<8x128xf32>
    %28 = vector.broadcast %25 : vector<1x128xf32> to vector<8x128xf32>
    %29 = arith.mulf %27, %28 : vector<8x128xf32>
    %30 = vector.broadcast %26 : vector<1x128xf32> to vector<8x128xf32>
    %31 = arith.addf %29, %30 : vector<8x128xf32>
    %c0_13 = arith.constant 0 : index
    %c0_14 = arith.constant 0 : index
    %32 = vector.load %arg5[%c0_13, %c0_14] : memref<8x128xf32, #tpu.memory_space<vmem>>, vector<8x128xf32>
    tpu.vector_store %arg5[%c0_13, %c0_14], %31 {strides = array<i32>} : memref<8x128xf32, #tpu.memory_space<vmem>>, vector<8x128xf32>,
    return
  }
  func.func @transform_0(%arg0: i32) -> (i32, i32) {
    %c0_i32 = arith.constant 0 : i32
    %c0_i32_0 = arith.constant 0 : i32
    return %arg0, %c0_i32 : i32, i32
  }
  func.func @transform_1(%arg0: i32) -> (i32, i32) {
    %c0_i32 = arith.constant 0 : i32
    %c0_i32_0 = arith.constant 0 : i32
    %c0_i32_1 = arith.constant 0 : i32
    return %c0_i32, %c0_i32_0 : i32, i32
  }
  func.func @transform_2(%arg0: i32) -> (i32, i32) {
    %c0_i32 = arith.constant 0 : i32
    %c0_i32_0 = arith.constant 0 : i32
    %c0_i32_1 = arith.constant 0 : i32
    return %c0_i32, %c0_i32_0 : i32, i32
  }
  func.func @transform_3(%arg0: i32) -> (i32, i32) {
    %c0_i32 = arith.constant 0 : i32
    %c0_i32_0 = arith.constant 0 : i32
    %c0_i32_1 = arith.constant 0 : i32
    return %c0_i32, %c0_i32_0 : i32, i32
  }
  func.func @transform_4(%arg0: i32) -> (i32, i32) {
    %c0_i32 = arith.constant 0 : i32
    %c0_i32_0 = arith.constant 0 : i32
    return %arg0, %c0_i32 : i32, i32
  }
}

</mosaic_0001>

<bundles_post_ra>
// kernel: tpu_custom_call.1
= control target key start
LH: loop header
LB: loop body
LE: loop exit
PB: predicated region body
PF: predicated region fallthrough
CT: control target
= control target key end

     0   :  { %9 = vsyncpa [#allocation3], 0  ;;  %s620_s0 = inlined_call_operand.hbm [shape: f32[8,128], index: 0, kind: input, shape index: {}]   ;;  %s621_s1 = inlined_call_operand.vmem [shape: f32[1,128], index: 1, kind: input, shape index: {}]   ;;  %s622_s2 = inlined_call_operand.vmem [shape: f32[1,128], index: 2, kind: input, shape index: {}]   ;;  %s623_s3 = inlined_call_operand.hbm [shape: bf16[128,128], index: 3, kind: input, shape index: {}]   ;;  %s624_s4 = inlined_call_operand.hbm [shape: f32[8,128], index: 4, kind: output, shape index: {}]  }
   0x1   :  { %10 = vsyncpa [#allocation6], 0 }
   0x2   :  { %11 = vsyncpa [#allocation4], 0  ;;  %s527_s15 = smov [#allocation2]   ;;  %s528_s17 = smov [#allocation5]  }
   0x3   :  { %s18_s16 = sshll.u32 %s527_s15, 4  ;;  %s31_s18 = sshll.u32 %s528_s17, 4  ;;  %s19_s16 = int_to_ptr.vmem [resolvable:$true] %s18_s16  ;;  %s32_s18 = int_to_ptr.vmem [resolvable:$true] %s31_s18 }
   0x4   :  { %s469_s19 = scalar_lea.vmem %s19_s16, 128  ;;  %p474_p1 = scmp.lt.s32.totalorder %s19_s16, %s19_s16 }
   0x5   :  { %p470_p0 = scmp.ne.s32.totalorder %s19_s16, %s469_s19  ;;  %p475_p2 = scmp.lt.s32.totalorder %s469_s19, %s469_s19 }
   0x7   :  { %p476_p3 = por %p475_p2, %p474_p1 }
   0x9   :  { %p477_p4 = pnand %p476_p3, %p470_p0 }
   0xb   :  { %480 = shalt.err (!%p477_p4)
}
   0xc   :  { %21 = dma.hbm_to_vmem [thread:$0]  %s620_s0, 128, %s19_s16, [#allocation3]  }
   0xd   :  { %s489_s22 = scalar_lea.vmem %s32_s18, 1024  ;;  %p494_p6 = scmp.lt.s32.totalorder %s32_s18, %s32_s18 }
   0xe   :  { %p490_p5 = scmp.ne.s32.totalorder %s32_s18, %s489_s22  ;;  %p495_p7 = scmp.lt.s32.totalorder %s489_s22, %s489_s22 }
  0x10   :  { %p496_p8 = por %p495_p7, %p494_p6 }
  0x12   :  { %p497_p9 = pnand %p496_p8, %p490_p5 }
  0x14   :  { %500 = shalt.err (!%p497_p9)
}
  0x15   :  { %s529_s23 = smov 64   ;;  %s530_s24 = smov 4  }
  0x16   :  { %37 = dma.hbm_to_vmem [thread:$0]  %s623_s3, 1024, %s32_s18, [#allocation6], %s529_s23, %s529_s23, %s530_s24  }
  0x17   :  { %521 = dma.done.wait [#allocation3], 128  }
  0x18   :  { %522 = vsyncadd [#allocation3], 4294967168 }
  0x19   :  { %523 = dma.done.wait [#allocation6], 1024  }
  0x1a   :  { %524 = vsyncadd [#allocation6], 4294966272  ;;  %v531_v0 = vmov 0.0   ;;  %vm532_vm0 = vmmov 0   ;;  %v451_v1 = vld [vmem:[#allocation5 + $0x38] sm:$0xff]   ;;  %v452_v2 = vld [vmem:[#allocation5 + $0x30] sm:$0xff]  }
  0x1b   :  { %364 = vmatprep.subr.bf16.mxu0 %v531_v0  ;;  %384 = vmatprep.subr.bf16.mxu1 %v531_v0  ;;  %v453_v3 = vld [vmem:[#allocation5 + $0x28] sm:$0xff]   ;;  %v454_v4 = vld [vmem:[#allocation5 + $0x20] sm:$0xff]   ;;  %v455_v5 = vld [vmem:[#allocation5 + $0x18] sm:$0xff]   ;;  %s533_s29 = smov [#allocation7]  }
  0x1c   :  { %380 = vmatprep.mubr.msk.bf16.mxu0 %vm532_vm0, %v531_v0  ;;  %400 = vmatprep.mubr.msk.bf16.mxu1 %vm532_vm0, %v531_v0  ;;  %v577_v6 = vld [vmem:[#allocation2] sm:$0xff]  ;;  %v456_v8 = vld [vmem:[#allocation5 + $0x10] sm:$0xff]   ;;  %v457_v10 = vld [vmem:[#allocation5 + $0x8] sm:$0xff]   ;;  %s308_s30 = sshll.u32 %s533_s29, 4  ;;  %s309_s30 = int_to_ptr.vmem [resolvable:$true] %s308_s30 }
  0x1d   :  { %365 = vmatpush3.bf16.msra.mxu0 %v451_v1  ;;  %385 = vmatpush3.bf16.msra.mxu1 %v451_v1  ;;  %v62_v7 = vpack.c.bf16 %v577_v6, %v577_v6  ;;  %v458_v12 = vld [vmem:[#allocation5] sm:$0xff]   ;;  %v326_v42 = vld [vmem:[%s621_s1] ss:$0 sm:$0xff]  ;;  %s501_s5 = scalar_lea.vmem %s309_s30, 128  ;;  %p506_p11 = scmp.lt.s32.totalorder %s309_s30, %s309_s30 }
  0x1e   :  { %366 = vmatprep.subr.bf16.mxu0 %v531_v0  ;;  %386 = vmatprep.subr.bf16.mxu1 %v531_v0  ;;  %v327_v44 = vld [vmem:[%s622_s2] ss:$0 sm:$0xff]  ;;  %p502_p10 = scmp.ne.s32.totalorder %s309_s30, %s501_s5  ;;  %p507_p12 = scmp.lt.s32.totalorder %s501_s5, %s501_s5 }
  0x1f   :  { %v63_v9 = vunpack.c.l.bf16 %v62_v7 }
  0x20   :  { %p508_p13 = por %p507_p12, %p506_p11 }
  0x21   :  { %367 = vmatpush3.bf16.msra.mxu0 %v452_v2  ;;  %387 = vmatpush3.bf16.msra.mxu1 %v452_v2  ;;  %v64_v11 = vsub.f32 %v577_v6, %v63_v9 }
  0x22   :  { %368 = vmatprep.subr.bf16.mxu0 %v531_v0  ;;  %388 = vmatprep.subr.bf16.mxu1 %v531_v0  ;;  %p509_p0 = pnand %p508_p13, %p502_p10 }
  0x23   :  { %v65_v13 = vpack.c.bf16 %v64_v11, %v64_v11 }
  0x25   :  { %369 = vmatpush3.bf16.msra.mxu0 %v453_v3  ;;  %389 = vmatpush3.bf16.msra.mxu1 %v453_v3 }
  0x26   :  { %370 = vmatprep.subr.bf16.mxu0 %v531_v0  ;;  %390 = vmatprep.subr.bf16.mxu1 %v531_v0 }
  0x29   :  { %371 = vmatpush3.bf16.msra.mxu0 %v454_v4  ;;  %391 = vmatpush3.bf16.msra.mxu1 %v454_v4 }
  0x2a   :  { %372 = vmatprep.subr.bf16.mxu0 %v531_v0  ;;  %392 = vmatprep.subr.bf16.mxu1 %v531_v0 }
  0x2d   :  { %373 = vmatpush3.bf16.msra.mxu0 %v455_v5  ;;  %393 = vmatpush3.bf16.msra.mxu1 %v455_v5 }
  0x2e   :  { %374 = vmatprep.subr.bf16.mxu0 %v531_v0  ;;  %394 = vmatprep.subr.bf16.mxu1 %v531_v0 }
  0x31   :  { %375 = vmatpush3.bf16.msra.mxu0 %v456_v8  ;;  %395 = vmatpush3.bf16.msra.mxu1 %v456_v8 }
  0x32   :  { %376 = vmatprep.subr.bf16.mxu0 %v531_v0  ;;  %396 = vmatprep.subr.bf16.mxu1 %v531_v0 }
  0x35   :  { %377 = vmatpush3.bf16.msra.mxu0 %v457_v10  ;;  %397 = vmatpush3.bf16.msra.mxu1 %v457_v10 }
  0x36   :  { %378 = vmatprep.subr.bf16.mxu0 %v531_v0  ;;  %398 = vmatprep.subr.bf16.mxu1 %v531_v0 }
  0x39   :  { %379 = vmatpush3.bf16.msra.mxu0 %v458_v12  ;;  %399 = vmatpush3.bf16.msra.mxu1 %v458_v12 }
  0x3a   :  { %424 = vmatprep.subr.bf16.mxu1 %v531_v0  ;;  %404 = vmatprep.subr.bf16.mxu0 %v531_v0 }
  0x3c   :  { %381 = vmatmul.mubr.bf16.vlgmr.msra.gmra.mxu0 %v65_v13  ;;  %401 = vmatmul.mubr.bf16.vlgmr.msra.gmra.mxu1 %v62_v7 }
  0x3d   :  { %425 = vmatpush3.bf16.msra.mxu1 %v451_v1  ;;  %405 = vmatpush3.bf16.msra.mxu0 %v451_v1 }
  0x3e   :  { %426 = vmatprep.subr.bf16.mxu1 %v531_v0  ;;  %406 = vmatprep.subr.bf16.mxu0 %v531_v0 }
  0x3f   :  { %440 = vmatprep.mubr.msk.bf16.mxu1 %vm532_vm0, %v531_v0  ;;  %420 = vmatprep.mubr.msk.bf16.mxu0 %vm532_vm0, %v531_v0 }
  0x41   :  { %427 = vmatpush3.bf16.msra.mxu1 %v452_v2  ;;  %407 = vmatpush3.bf16.msra.mxu0 %v452_v2 }
  0x42   :  { %428 = vmatprep.subr.bf16.mxu1 %v531_v0  ;;  %408 = vmatprep.subr.bf16.mxu0 %v531_v0 }
  0x45   :  { %429 = vmatpush3.bf16.msra.mxu1 %v453_v3  ;;  %409 = vmatpush3.bf16.msra.mxu0 %v453_v3 }
  0x46   :  { %430 = vmatprep.subr.bf16.mxu1 %v531_v0  ;;  %410 = vmatprep.subr.bf16.mxu0 %v531_v0 }
  0x49   :  { %431 = vmatpush3.bf16.msra.mxu1 %v454_v4  ;;  %411 = vmatpush3.bf16.msra.mxu0 %v454_v4 }
  0x4a   :  { %432 = vmatprep.subr.bf16.mxu1 %v531_v0  ;;  %412 = vmatprep.subr.bf16.mxu0 %v531_v0 }
  0x4d   :  { %433 = vmatpush3.bf16.msra.mxu1 %v455_v5  ;;  %413 = vmatpush3.bf16.msra.mxu0 %v455_v5 }
  0x4e   :  { %434 = vmatprep.subr.bf16.mxu1 %v531_v0  ;;  %414 = vmatprep.subr.bf16.mxu0 %v531_v0 }
  0x51   :  { %435 = vmatpush3.bf16.msra.mxu1 %v456_v8  ;;  %415 = vmatpush3.bf16.msra.mxu0 %v456_v8 }
  0x52   :  { %436 = vmatprep.subr.bf16.mxu1 %v531_v0  ;;  %416 = vmatprep.subr.bf16.mxu0 %v531_v0 }
  0x55   :  { %437 = vmatpush3.bf16.msra.mxu1 %v457_v10  ;;  %417 = vmatpush3.bf16.msra.mxu0 %v457_v10 }
  0x56   :  { %438 = vmatprep.subr.bf16.mxu1 %v531_v0  ;;  %418 = vmatprep.subr.bf16.mxu0 %v531_v0 }
  0x59   :  { %439 = vmatpush3.bf16.msra.mxu1 %v458_v12  ;;  %419 = vmatpush3.bf16.msra.mxu0 %v458_v12 }
  0xfc   :  { %v148_v14 = vpop.f32.mrf.mxu0  ;;  %v188_v15 = vpop.f32.mrf.mxu1 }
  0xfd   :  { %v189_v16 = vadd.f32 %v188_v15, %v148_v14 }
  0xfe   :  { %v382_v17 = vpop.f32.mrf.mxu0  ;;  %v402_v18 = vpop.f32.mrf.mxu1 }
  0xff   :  { %v194_v19 = vmul.f32 0.03125, %v189_v16 }
 0x100   :  { %v151_v20 = vpop.f32.mrf.mxu0  ;;  %v191_v21 = vpop.f32.mrf.mxu1 }
 0x101   :  { %v195_v22 = vsub.f32 %v577_v6, %v194_v19 }
 0x102   :  { %v383_v23 = vpop.f32.mrf.mxu0  ;;  %v403_v24 = vpop.f32.mrf.mxu1 }
 0x103   :  { %v196_v25 = vmul.f32 %v195_v22, %v195_v22 }
 0x105   :  { %v197_v26 = vpack.c.bf16 %v196_v25, %v196_v25 }
 0x107   :  { %v198_v27 = vunpack.c.l.bf16 %v197_v26  ;;  %441 = vmatmul.mubr.bf16.vlgmr.msra.gmra.mxu1 %v197_v26 }
 0x109   :  { %v199_v28 = vsub.f32 %v196_v25, %v198_v27 }
 0x10b   :  { %v200_v29 = vpack.c.bf16 %v199_v28, %v199_v28 }
 0x10d   :  { %421 = vmatmul.mubr.bf16.vlgmr.msra.gmra.mxu0 %v200_v29 }
 0x1c7   :  { %v275_v30 = vpop.f32.mrf.mxu1 }
 0x1c9   :  { %v442_v31 = vpop.f32.mrf.mxu1 }
 0x1cb   :  { %v278_v32 = vpop.f32.mrf.mxu1 }
 0x1cd   :  { %v235_v33 = vpop.f32.mrf.mxu0  ;;  %v443_v34 = vpop.f32.mrf.mxu1 }
 0x1ce   :  { %v276_v35 = vadd.f32 %v275_v30, %v235_v33 }
 0x1cf   :  { %v422_v36 = vpop.f32.mrf.mxu0 }
 0x1d0   :  { %v281_v37 = vmul.f32 0.03125, %v276_v35 }
 0x1d1   :  { %v238_v38 = vpop.f32.mrf.mxu0 }
 0x1d2   :  { %v282_v39 = vadd.f32 1e-05, %v281_v37 }
 0x1d3   :  { %v423_v40 = vpop.f32.mrf.mxu0 }
 0x1d4   :  { %459 = vrsqrt.f32 %v282_v39 }
 0x1e1   :  { %v460_v41 = vpop.eup %459 }
 0x1e2   :  { %v286_v43 = vmul.f32 %v460_v41, %v195_v22 }
 0x1e4   :  { %v293_v45 = vmul.f32 %v326_v42, %v286_v43 }
 0x1e6   :  { %v300_v46 = vadd.f32 %v327_v44, %v293_v45 }
 0x1e8   :  { %301 = vst [vmem:[#allocation7] sm:$0xff] %v300_v46 }
 0x1e9   :  { %512 = shalt.err (!%p509_p0)
}
 0x1ea   :  { %311 = dma.vmem_to_hbm [thread:$0]  %s309_s30, 128, %s624_s4, [#allocation4]  }
 0x1eb   :  { %525 = dma.done.wait [#allocation4], 128  }
 0x1ec   :  { %526 = vsyncadd [#allocation4], 4294967168 }
 0x1ed   :  { %315 = vsyncpa [#allocation3], 1 }
 0x1ee   :  { %316 = vsyncpa [#allocation6], 1 }
 0x1ef   :  { %317 = vsyncpa [#allocation4], 1 }

</bundles_post_ra>
